<compile_context>
chip_gen: v5e
topology: v5e:2x2
jax: 0.10.0
libtpu: 0.0.40
codegen_flags: <defaults>
</compile_context>

<pallas_src>
import jax
import jax.numpy as jnp
from jax.experimental import pallas as pl
from jax.experimental.pallas import tpu as pltpu


def _mymodel_kernel(x_ref, w_ref, out_ref):
    # x_ref   : VMEM (M, D)   f32, resident across the whole grid
    # w_ref   : VMEM (TN, D)  native W dtype, one row tile of W per grid step
    # out_ref : VMEM (8, M)   f32, per-core partial accumulator (row 0 used); resident
    #           across the reduction axis (its block index is constant over j).
    j = pl.program_id(1)

    @pl.when(j == 0)
    def _():
        out_ref[...] = jnp.zeros_like(out_ref)

    w_tile = w_ref[...].astype(jnp.float32)               # (TN, D)  f32 accumulate
    col_sum = jnp.sum(w_tile, axis=0, keepdims=True)      # (1, D)   sublane reduce
    partial = jnp.sum(x_ref[...] * col_sum, axis=-1)      # (M,)     lane reduce
    out_ref[0, :] = out_ref[0, :] + partial


def _pick_row_tile(d, itemsize, *, max_rows=512, max_bytes=8 << 20):
    """Largest row-tile TN such that: TN divides d, TN is a multiple of the dtype's
    sublane packing (8/16/32 for 4/2/1-byte dtypes), TN <= max_rows, and the (TN, d)
    tile fits in max_bytes.  Falls back to the full extent (always legal)."""
    align = max(8, 32 // itemsize)
    bytes_per_row = d * itemsize
    cap = min(d, max_rows, max(align, max_bytes // bytes_per_row))
    best = None
    t = align
    while t <= cap:
        if d % t == 0:
            best = t
        t += align
    return best if best is not None else d


def mymodel_forward_batched(x, w, b, *, dim_hidden, dim_hidden_large=None,
                            ids_do_hidden_large=None,
                            max_tile_bytes=8 << 20, max_tile_rows=512):
    """Batched Pallas implementation of MyModel.forward.

    x: (M, dim_io); w: (dim_io, dim_io) nn.Linear weight in native layout/dtype
    (NOT transposed, NOT upcast); b: (dim_io,).  Returns (M,) f32 — one scalar
    answer per row, with the data-dependent repeat_dim branch evaluated per row.
    """
    x = jnp.asarray(x)
    w = jnp.asarray(w)
    b = jnp.asarray(b)
    M, D = x.shape

    # Hoisted data-dependent branch (per row): repeat_dim r.
    has_large = (ids_do_hidden_large is not None) and (dim_hidden_large is not None)
    if has_large:
        ids_arr = jnp.asarray(ids_do_hidden_large, dtype=jnp.int32)
        idx = x[:, 0].astype(jnp.int32)                      # trunc-toward-zero, like int()
        found = jnp.isin(idx, ids_arr)
        r = jnp.where(found, jnp.float32(dim_hidden_large), jnp.float32(dim_hidden))
    else:
        r = jnp.full((M,), jnp.float32(dim_hidden))

    x_f32 = x.astype(jnp.float32)
    b_f32 = b.astype(jnp.float32)

    itemsize = w.dtype.itemsize
    tn = _pick_row_tile(D, itemsize, max_rows=max_tile_rows, max_bytes=max_tile_bytes)
    grid_rows = D // tn
    num_cores = 2 if (grid_rows >= 2 and grid_rows % 2 == 0) else 1
    steps = grid_rows // num_cores

    def x_index_map(c, j):
        return (0, 0)

    def w_index_map(c, j):
        return (c * steps + j, 0)

    def out_index_map(c, j):
        return (c, 0)

    grid_spec = pltpu.PrefetchScalarGridSpec(
        num_scalar_prefetch=0,
        grid=(num_cores, steps),
        in_specs=[
            pl.BlockSpec((M, D), x_index_map),     # X resident, one DMA total
            pl.BlockSpec((tn, D), w_index_map),    # W row tile, double-buffered
        ],
        # (8, M) per core: sublane-aligned block, row 0 carries the partial.
        out_specs=pl.BlockSpec((8, M), out_index_map),
    )

    tile_bytes = tn * D * itemsize
    vmem_limit = int(2 * tile_bytes + M * D * 4 + (4 << 20))
    vmem_limit = min(max(vmem_limit, 32 << 20), 48 << 20)   # explicit: safe on v5e/v6e/v7x

    cost = pl.CostEstimate(
        flops=int(D) * int(D) + 2 * M * D * grid_rows,
        transcendentals=0,
        bytes_accessed=int(w.size) * itemsize + M * D * 4 + num_cores * 8 * M * 4,
    )

    partials = pl.pallas_call(
        _mymodel_kernel,
        out_shape=jax.ShapeDtypeStruct((num_cores * 8, M), jnp.float32),
        grid_spec=grid_spec,
        compiler_params=pltpu.CompilerParams(
            dimension_semantics=("parallel", "arbitrary"),
            vmem_limit_bytes=vmem_limit),
        cost_estimate=cost,
    )(x_f32, w)

    # Rows 1..7 of each per-core block are zeros, so a plain sum combines the cores.
    update_sum = jnp.sum(partials, axis=0) + jnp.sum(b_f32)          # (M,)
    return jnp.sum(x_f32, axis=-1) + r * update_sum                  # (M,)


def mymodel_forward(x, w, b, *, dim_hidden, dim_hidden_large=None,
                    ids_do_hidden_large=None, **tile_kwargs):
    """Single-sample MyModel.forward (x: (dim_io,)). Returns a scalar f32."""
    out = mymodel_forward_batched(
        jnp.asarray(x)[None, :], w, b, dim_hidden=dim_hidden,
        dim_hidden_large=dim_hidden_large,
        ids_do_hidden_large=ids_do_hidden_large, **tile_kwargs)
    return out[0]


def _reference_forward(x, w, b, *, dim_hidden, dim_hidden_large, ids):
    """Pure-JAX reference mirroring the PyTorch semantics (single sample)."""
    xf = jnp.asarray(x).astype(jnp.float32)
    wf = jnp.asarray(w).astype(jnp.float32)
    bf = jnp.asarray(b).astype(jnp.float32)
    update = xf @ wf.T + bf
    if (ids is not None) and (dim_hidden_large is not None):
        idx = xf[0].astype(jnp.int32)
        found = jnp.isin(idx, jnp.asarray(ids, dtype=jnp.int32))
        rr = jnp.where(found, jnp.float32(dim_hidden_large), jnp.float32(dim_hidden))
    else:
        rr = jnp.float32(dim_hidden)
    return jnp.sum(xf + rr * update)


if __name__ == "__main__":
    dim_io = 512
    dim_hidden = 32
    dim_hidden_large = 64
    ids_do_hidden_large = [0, 3, 7]

    key = jax.random.PRNGKey(0)
    kx, kw, kb = jax.random.split(key, 3)

    # torch.nn.Linear-style uniform init.
    bound = 1.0 / (dim_io ** 0.5)
    w = jax.random.uniform(kw, (dim_io, dim_io), jnp.float32, -bound, bound)
    b = jax.random.uniform(kb, (dim_io,), jnp.float32, -bound, bound)

    x = jax.random.normal(kx, (dim_io,), jnp.float32)
    x = x.at[0].set(3.0)      # idx = 3 -> large-hidden branch
    x_small = x.at[0].set(5.0)  # idx = 5 -> normal branch
    x_zero = x.at[0].set(0.0)   # idx = 0 -> large-hidden branch

    def ref(xi, wi, **kw_):
        return _reference_forward(xi, wi, b, **kw_)

    # Case 1: large-hidden branch, default (single big tile) config.
    out1 = jax.block_until_ready(
        mymodel_forward(x, w, b, dim_hidden=dim_hidden,
                        dim_hidden_large=dim_hidden_large,
                        ids_do_hidden_large=ids_do_hidden_large))
    ref1 = ref(x, w, dim_hidden=dim_hidden, dim_hidden_large=dim_hidden_large,
               ids=ids_do_hidden_large)
    assert jnp.allclose(out1, ref1, rtol=1e-3, atol=5e-2), (out1, ref1)

    # Case 2: non-large branch.
    out2 = jax.block_until_ready(
        mymodel_forward(x_small, w, b, dim_hidden=dim_hidden,
                        dim_hidden_large=dim_hidden_large,
                        ids_do_hidden_large=ids_do_hidden_large))
    ref2 = ref(x_small, w, dim_hidden=dim_hidden, dim_hidden_large=dim_hidden_large,
               ids=ids_do_hidden_large)
    assert jnp.allclose(out2, ref2, rtol=1e-3, atol=5e-2), (out2, ref2)

    # Case 3: no ids_do_hidden_large configured at all.
    out3 = jax.block_until_ready(mymodel_forward(x, w, b, dim_hidden=dim_hidden))
    ref3 = ref(x, w, dim_hidden=dim_hidden, dim_hidden_large=None, ids=None)
    assert jnp.allclose(out3, ref3, rtol=1e-3, atol=5e-2), (out3, ref3)

    # Case 4: batched call with a forced multi-tile grid (exercises the pipelined
    # W stream and the 2-way core split; runs fine on 1-TC chips too).
    X = jnp.stack([x, x_small, x_zero], axis=0)          # (3, 512)
    out4 = jax.block_until_ready(
        mymodel_forward_batched(X, w, b, dim_hidden=dim_hidden,
                                dim_hidden_large=dim_hidden_large,
                                ids_do_hidden_large=ids_do_hidden_large,
                                max_tile_bytes=128 * 1024))
    ref4 = jnp.stack([
        ref(X[i], w, dim_hidden=dim_hidden, dim_hidden_large=dim_hidden_large,
            ids=ids_do_hidden_large) for i in range(3)])
    assert jnp.allclose(out4, ref4, rtol=1e-3, atol=5e-2), (out4, ref4)

    # Case 5: native bf16 weights streamed without any wrapper upcast.
    w_bf16 = w.astype(jnp.bfloat16)
    out5 = jax.block_until_ready(
        mymodel_forward(x, w_bf16, b, dim_hidden=dim_hidden,
                        dim_hidden_large=dim_hidden_large,
                        ids_do_hidden_large=ids_do_hidden_large,
                        max_tile_bytes=64 * 1024))
    ref5 = ref(x, w_bf16, dim_hidden=dim_hidden, dim_hidden_large=dim_hidden_large,
               ids=ids_do_hidden_large)
    assert jnp.allclose(out5, ref5, rtol=5e-3, atol=0.5), (out5, ref5)

    print("KERNEL_OK")
</pallas_src>

<mosaic_0001>
module attributes {stable_mosaic.version = 11 : i64} {
  func.func @_mymodel_kernel(%arg0: i32, %arg1: i32, %arg2: memref<1x512xf32, #tpu.memory_space<vmem>>, %arg3: memref<512x512xf32, #tpu.memory_space<vmem>>, %arg4: memref<8x1xf32, #tpu.memory_space<vmem>>) attributes {dimension_semantics = [#tpu.dimension_semantics<parallel>, #tpu.dimension_semantics<arbitrary>], iteration_bounds = array<i64: 1, 1>, scalar_prefetch = 0 : i64, scratch_operands = 0 : i64, tpu.core_type = #tpu.core_type<tc>, window_params = [{pipeline_mode = #tpu.pipeline_mode<synchronous>, transform_indices = @transform_0, window_bounds = array<i64: 1, 512>}, {transform_indices = @transform_1, window_bounds = array<i64: 512, 512>}, {transform_indices = @transform_2, window_bounds = array<i64: 8, 1>}]} {
    %c0_i32 = arith.constant 0 : i32
    %0 = arith.cmpi eq, %arg1, %c0_i32 : i32
    %1 = arith.extui %0 : i1 to i32
    %c0_i32_0 = arith.constant 0 : i32
    %2 = arith.cmpi ne, %1, %c0_i32_0 : i32
    scf.if %2 {
      %cst_9 = arith.constant 0.000000e+00 : f32
      %15 = vector.broadcast %cst_9 : f32 to vector<8x1xf32>
      %c0_10 = arith.constant 0 : index
      %c0_11 = arith.constant 0 : index
      %16 = vector.load %arg4[%c0_10, %c0_11] : memref<8x1xf32, #tpu.memory_space<vmem>>, vector<8x1xf32>
      tpu.vector_store %arg4[%c0_10, %c0_11], %15 {strides = array<i32>} : memref<8x1xf32, #tpu.memory_space<vmem>>, vector<8x1xf32>,
    } else {
    }
    %c0 = arith.constant 0 : index
    %c0_1 = arith.constant 0 : index
    %3 = vector.load %arg3[%c0, %c0_1] : memref<512x512xf32, #tpu.memory_space<vmem>>, vector<512x512xf32>
    %cst = arith.constant dense<0.000000e+00> : vector<512xf32>
    %4 = vector.multi_reduction <add>, %3, %cst [0] : vector<512x512xf32> to vector<512xf32>
    %5 = vector.shape_cast %4 : vector<512xf32> to vector<1x512xf32>
    %c0_2 = arith.constant 0 : index
    %c0_3 = arith.constant 0 : index
    %6 = vector.load %arg2[%c0_2, %c0_3] : memref<1x512xf32, #tpu.memory_space<vmem>>, vector<1x512xf32>
    %7 = arith.mulf %6, %5 : vector<1x512xf32>
    %cst_4 = arith.constant dense<0.000000e+00> : vector<1xf32>
    %8 = vector.multi_reduction <add>, %7, %cst_4 [1] : vector<1x512xf32> to vector<1xf32>
    %c0_5 = arith.constant 0 : index
    %c0_6 = arith.constant 0 : index
    %9 = vector.load %arg4[%c0_5, %c0_6] : memref<8x1xf32, #tpu.memory_space<vmem>>, vector<1x1xf32>
    %10 = vector.shape_cast %9 : vector<1x1xf32> to vector<1xf32>
    %11 = arith.addf %10, %8 : vector<1xf32>
    %c0_7 = arith.constant 0 : index
    %c0_8 = arith.constant 0 : index
    %12 = vector.load %arg4[%c0_7, %c0_8] : memref<8x1xf32, #tpu.memory_space<vmem>>, vector<1x1xf32>
    %13 = vector.shape_cast %12 : vector<1x1xf32> to vector<1xf32>
    %14 = vector.shape_cast %11 : vector<1xf32> to vector<1x1xf32>
    tpu.vector_store %arg4[%c0_7, %c0_8], %14 {strides = array<i32>} : memref<8x1xf32, #tpu.memory_space<vmem>>, vector<1x1xf32>,
    return
  }
  func.func @transform_0(%arg0: i32, %arg1: i32) -> (i32, i32) {
    %c0_i32 = arith.constant 0 : i32
    %c0_i32_0 = arith.constant 0 : i32
    %c0_i32_1 = arith.constant 0 : i32
    return %c0_i32, %c0_i32_0 : i32, i32
  }
  func.func @transform_1(%arg0: i32, %arg1: i32) -> (i32, i32) {
    %c1_i32 = arith.constant 1 : i32
    %0 = arith.muli %arg0, %c1_i32 : i32
    %1 = arith.addi %0, %arg1 : i32
    %c0_i32 = arith.constant 0 : i32
    %c0_i32_0 = arith.constant 0 : i32
    return %1, %c0_i32 : i32, i32
  }
  func.func @transform_2(%arg0: i32, %arg1: i32) -> (i32, i32) {
    %c0_i32 = arith.constant 0 : i32
    %c0_i32_0 = arith.constant 0 : i32
    return %arg0, %c0_i32 : i32, i32
  }
}

</mosaic_0001>

<bundles_post_ra>
// kernel: tpu_custom_call.1
= control target key start
LH: loop header
LB: loop body
LE: loop exit
PB: predicated region body
PF: predicated region fallthrough
CT: control target
= control target key end

     0   :  { %7 = vsyncpa [#allocation3], 0  ;;  %s727_s0 = inlined_call_operand.hbm [shape: f32[1,512], index: 0, kind: input, shape index: {}]   ;;  %s728_s1 = inlined_call_operand.hbm [shape: f32[512,512], index: 1, kind: input, shape index: {}]   ;;  %s729_s2 = inlined_call_operand.vmem [shape: f32[8,1], index: 2, kind: output, shape index: {}]  }
   0x1   :  { %s14_s11 = sshll.u32 %s727_s0, 4  ;;  %s15_s11 = int_to_ptr.hbm [resolvable:$true] %s14_s11 }
   0x2   :  { %8 = vsyncpa [#allocation5], 0  ;;  %s687_s12 = smov [#allocation2]   ;;  %s29_s16 = sshll.u32 %s728_s1, 4  ;;  %s30_s16 = int_to_ptr.hbm [resolvable:$true] %s29_s16 }
   0x3   :  { %s16_s13 = sshll.u32 %s687_s12, 4  ;;  %s688_s17 = smov [#allocation4]   ;;  %s17_s13 = int_to_ptr.vmem [resolvable:$true] %s16_s13 }
   0x4   :  { %19 = dma.hbm_to_vmem [thread:$0]  %s15_s11, 64, %s17_s13, [#allocation3]  }
   0x5   :  { %s31_s18 = sshll.u32 %s688_s17, 4  ;;  %s689_s19 = smov 512   ;;  %s32_s18 = int_to_ptr.vmem [resolvable:$true] %s31_s18 }
   0x6   :  { %s690_s20 = smov 32  }
   0x7   :  { %37 = dma.hbm_to_vmem [thread:$0]  %s30_s16, 32768, %s32_s18, [#allocation5], %s689_s19, %s689_s19, %s690_s20  }
   0x8   :  { %683 = dma.done.wait [#allocation3], 64  }
   0x9   :  { %684 = vsyncadd [#allocation3], 4294967232 }
   0xa   :  { %685 = dma.done.wait [#allocation5], 32768  }
   0xb   :  { %686 = vsyncadd [#allocation5], 4294934528  ;;  %vm52_vm0 = vcmask 7168   ;;  %v691_v0 = vmov 0.0   ;;  %v54_v1 = vld [vmem:[#allocation4] sm:$0xff]  ;;  %v55_v2 = vld [vmem:[#allocation4 + $0x8] sm:$0xff] }
   0xc   :  { %53 = vst.msk [vmem:[%s729_s2] sm:$0xff] %vm52_vm0, %v691_v0  ;;  %v56_v3 = vld [vmem:[#allocation4 + $0x10] sm:$0xff]  ;;  %v57_v4 = vld [vmem:[#allocation4 + $0x18] sm:$0xff]  ;;  %v58_v5 = vld [vmem:[#allocation4 + $0x20] sm:$0xff]  ;;  %vm594_vm1 = vcmask 1040384   ;;  %vm596_vm2 = vcmask 1042434  }
   0xd   :  { %v59_v6 = vld [vmem:[#allocation4 + $0x28] sm:$0xff]  ;;  %v60_v7 = vld [vmem:[#allocation4 + $0x30] sm:$0xff]  ;;  %v61_v8 = vld [vmem:[#allocation4 + $0x38] sm:$0xff]  ;;  %v310_v10 = vadd.f32 %v58_v5, %v54_v1  ;;  %vm598_vm3 = vcmask 1041408   ;;  %vm622_vm4 = vcmask 0  }
   0xe   :  { %v62_v9 = vld [vmem:[#allocation4 + $0x40] sm:$0xff]  ;;  %v379_v11 = vadd.f32 %v59_v6, %v55_v2  ;;  %v63_v12 = vld [vmem:[#allocation4 + $0x48] sm:$0xff]  ;;  %v64_v13 = vld [vmem:[#allocation4 + $0x50] sm:$0xff]  ;;  %v448_v15 = vadd.f32 %v60_v7, %v56_v3  ;;  %v517_v16 = vadd.f32 %v61_v8, %v57_v4 }
   0xf   :  { %v65_v14 = vld [vmem:[#allocation4 + $0x58] sm:$0xff]  ;;  %v66_v17 = vld [vmem:[#allocation4 + $0x60] sm:$0xff]  ;;  %v67_v18 = vld [vmem:[#allocation4 + $0x68] sm:$0xff]  ;;  %v311_v20 = vadd.f32 %v310_v10, %v62_v9 }
  0x10   :  { %v68_v19 = vld [vmem:[#allocation4 + $0x70] sm:$0xff]  ;;  %v380_v21 = vadd.f32 %v379_v11, %v63_v12  ;;  %v69_v22 = vld [vmem:[#allocation4 + $0x78] sm:$0xff]  ;;  %v70_v23 = vld [vmem:[#allocation4 + $0x80] sm:$0xff]  ;;  %v449_v25 = vadd.f32 %v448_v15, %v64_v13  ;;  %v518_v26 = vadd.f32 %v517_v16, %v65_v14 }
  0x11   :  { %v71_v24 = vld [vmem:[#allocation4 + $0x88] sm:$0xff]  ;;  %v72_v27 = vld [vmem:[#allocation4 + $0x90] sm:$0xff]  ;;  %v73_v28 = vld [vmem:[#allocation4 + $0x98] sm:$0xff]  ;;  %v312_v29 = vadd.f32 %v311_v20, %v66_v17 }
  0x12   :  { %v381_v30 = vadd.f32 %v380_v21, %v67_v18  ;;  %v74_v31 = vld [vmem:[#allocation4 + $0xa0] sm:$0xff]  ;;  %v75_v32 = vld [vmem:[#allocation4 + $0xa8] sm:$0xff]  ;;  %v450_v33 = vadd.f32 %v449_v25, %v68_v19  ;;  %v519_v34 = vadd.f32 %v518_v26, %v69_v22  ;;  %v76_v35 = vld [vmem:[#allocation4 + $0xb0] sm:$0xff] }
  0x13   :  { %v77_v36 = vld [vmem:[#allocation4 + $0xb8] sm:$0xff]  ;;  %v313_v37 = vadd.f32 %v312_v29, %v70_v23  ;;  %v78_v39 = vld [vmem:[#allocation4 + $0xc0] sm:$0xff]  ;;  %v79_v40 = vld [vmem:[#allocation4 + $0xc8] sm:$0xff] }
  0x14   :  { %v382_v38 = vadd.f32 %v381_v30, %v71_v24  ;;  %v451_v41 = vadd.f32 %v450_v33, %v72_v27  ;;  %v520_v42 = vadd.f32 %v519_v34, %v73_v28  ;;  %v80_v43 = vld [vmem:[#allocation4 + $0xd0] sm:$0xff]  ;;  %v81_v44 = vld [vmem:[#allocation4 + $0xd8] sm:$0xff]  ;;  %v82_v47 = vld [vmem:[#allocation4 + $0xe0] sm:$0xff] }
  0x15   :  { %v314_v45 = vadd.f32 %v313_v37, %v74_v31  ;;  %v83_v48 = vld [vmem:[#allocation4 + $0xe8] sm:$0xff]  ;;  %v84_v51 = vld [vmem:[#allocation4 + $0xf0] sm:$0xff]  ;;  %v85_v52 = vld [vmem:[#allocation4 + $0xf8] sm:$0xff] }
  0x16   :  { %v383_v46 = vadd.f32 %v382_v38, %v75_v32  ;;  %v452_v49 = vadd.f32 %v451_v41, %v76_v35  ;;  %v521_v50 = vadd.f32 %v520_v42, %v77_v36  ;;  %v86_v55 = vld [vmem:[#allocation4 + $0x100] sm:$0xff]  ;;  %v87_v56 = vld [vmem:[#allocation4 + $0x108] sm:$0xff]  ;;  %v88_v59 = vld [vmem:[#allocation4 + $0x110] sm:$0xff] }
  0x17   :  { %v315_v53 = vadd.f32 %v314_v45, %v78_v39  ;;  %v89_v60 = vld [vmem:[#allocation4 + $0x118] sm:$0xff]  ;;  %v90_v63 = vld [vmem:[#allocation4 + $0x120] sm:$0xff]  ;;  %v91_v0 = vld [vmem:[#allocation4 + $0x128] sm:$0xff] }
  0x18   :  { %v384_v54 = vadd.f32 %v383_v46, %v79_v40  ;;  %v453_v57 = vadd.f32 %v452_v49, %v80_v43  ;;  %v522_v58 = vadd.f32 %v521_v50, %v81_v44  ;;  %v92_v3 = vld [vmem:[#allocation4 + $0x130] sm:$0xff]  ;;  %v93_v4 = vld [vmem:[#allocation4 + $0x138] sm:$0xff]  ;;  %v94_v7 = vld [vmem:[#allocation4 + $0x140] sm:$0xff] }
  0x19   :  { %v316_v61 = vadd.f32 %v315_v53, %v82_v47  ;;  %v95_v8 = vld [vmem:[#allocation4 + $0x148] sm:$0xff]  ;;  %v96_v11 = vld [vmem:[#allocation4 + $0x150] sm:$0xff]  ;;  %v97_v12 = vld [vmem:[#allocation4 + $0x158] sm:$0xff] }
  0x1a   :  { %v385_v62 = vadd.f32 %v384_v54, %v83_v48  ;;  %v454_v1 = vadd.f32 %v453_v57, %v84_v51  ;;  %v523_v2 = vadd.f32 %v522_v58, %v85_v52  ;;  %v98_v15 = vld [vmem:[#allocation4 + $0x160] sm:$0xff]  ;;  %v99_v16 = vld [vmem:[#allocation4 + $0x168] sm:$0xff]  ;;  %v100_v19 = vld [vmem:[#allocation4 + $0x170] sm:$0xff] }
  0x1b   :  { %v317_v5 = vadd.f32 %v316_v61, %v86_v55  ;;  %v101_v20 = vld [vmem:[#allocation4 + $0x178] sm:$0xff]  ;;  %v102_v23 = vld [vmem:[#allocation4 + $0x180] sm:$0xff]  ;;  %v103_v24 = vld [vmem:[#allocation4 + $0x188] sm:$0xff] }
  0x1c   :  { %v386_v6 = vadd.f32 %v385_v62, %v87_v56  ;;  %v455_v9 = vadd.f32 %v454_v1, %v88_v59  ;;  %v524_v10 = vadd.f32 %v523_v2, %v89_v60  ;;  %v104_v27 = vld [vmem:[#allocation4 + $0x190] sm:$0xff]  ;;  %v105_v28 = vld [vmem:[#allocation4 + $0x198] sm:$0xff]  ;;  %v106_v31 = vld [vmem:[#allocation4 + $0x1a0] sm:$0xff] }
  0x1d   :  { %v318_v13 = vadd.f32 %v317_v5, %v90_v63  ;;  %v107_v32 = vld [vmem:[#allocation4 + $0x1a8] sm:$0xff]  ;;  %v108_v35 = vld [vmem:[#allocation4 + $0x1b0] sm:$0xff]  ;;  %v109_v36 = vld [vmem:[#allocation4 + $0x1b8] sm:$0xff] }
  0x1e   :  { %v387_v14 = vadd.f32 %v386_v6, %v91_v0  ;;  %v456_v17 = vadd.f32 %v455_v9, %v92_v3  ;;  %v525_v18 = vadd.f32 %v524_v10, %v93_v4  ;;  %v110_v39 = vld [vmem:[#allocation4 + $0x1c0] sm:$0xff]  ;;  %v111_v40 = vld [vmem:[#allocation4 + $0x1c8] sm:$0xff]  ;;  %v112_v43 = vld [vmem:[#allocation4 + $0x1d0] sm:$0xff] }
  0x1f   :  { %v319_v21 = vadd.f32 %v318_v13, %v94_v7  ;;  %v113_v44 = vld [vmem:[#allocation4 + $0x1d8] sm:$0xff]  ;;  %v114_v47 = vld [vmem:[#allocation4 + $0x1e0] sm:$0xff]  ;;  %v115_v48 = vld [vmem:[#allocation4 + $0x1e8] sm:$0xff] }
  0x20   :  { %v388_v22 = vadd.f32 %v387_v14, %v95_v8  ;;  %v457_v25 = vadd.f32 %v456_v17, %v96_v11  ;;  %v526_v26 = vadd.f32 %v525_v18, %v97_v12  ;;  %v116_v51 = vld [vmem:[#allocation4 + $0x1f0] sm:$0xff]  ;;  %v117_v52 = vld [vmem:[#allocation4 + $0x1f8] sm:$0xff]  ;;  %v118_v55 = vld [vmem:[#allocation4 + $0x200] sm:$0xff] }
  0x21   :  { %v320_v29 = vadd.f32 %v319_v21, %v98_v15  ;;  %v119_v56 = vld [vmem:[#allocation4 + $0x208] sm:$0xff]  ;;  %v120_v59 = vld [vmem:[#allocation4 + $0x210] sm:$0xff]  ;;  %v121_v60 = vld [vmem:[#allocation4 + $0x218] sm:$0xff] }
  0x22   :  { %v389_v30 = vadd.f32 %v388_v22, %v99_v16  ;;  %v458_v33 = vadd.f32 %v457_v25, %v100_v19  ;;  %v527_v34 = vadd.f32 %v526_v26, %v101_v20  ;;  %v122_v63 = vld [vmem:[#allocation4 + $0x220] sm:$0xff]  ;;  %v123_v0 = vld [vmem:[#allocation4 + $0x228] sm:$0xff]  ;;  %v124_v3 = vld [vmem:[#allocation4 + $0x230] sm:$0xff] }
  0x23   :  { %v321_v37 = vadd.f32 %v320_v29, %v102_v23  ;;  %v125_v4 = vld [vmem:[#allocation4 + $0x238] sm:$0xff]  ;;  %v126_v7 = vld [vmem:[#allocation4 + $0x240] sm:$0xff]  ;;  %v127_v8 = vld [vmem:[#allocation4 + $0x248] sm:$0xff] }
  0x24   :  { %v390_v38 = vadd.f32 %v389_v30, %v103_v24  ;;  %v459_v41 = vadd.f32 %v458_v33, %v104_v27  ;;  %v528_v42 = vadd.f32 %v527_v34, %v105_v28  ;;  %v128_v11 = vld [vmem:[#allocation4 + $0x250] sm:$0xff]  ;;  %v129_v12 = vld [vmem:[#allocation4 + $0x258] sm:$0xff]  ;;  %v130_v15 = vld [vmem:[#allocation4 + $0x260] sm:$0xff] }
  0x25   :  { %v322_v45 = vadd.f32 %v321_v37, %v106_v31  ;;  %v131_v16 = vld [vmem:[#allocation4 + $0x268] sm:$0xff]  ;;  %v132_v19 = vld [vmem:[#allocation4 + $0x270] sm:$0xff]  ;;  %v133_v20 = vld [vmem:[#allocation4 + $0x278] sm:$0xff] }
  0x26   :  { %v391_v46 = vadd.f32 %v390_v38, %v107_v32  ;;  %v460_v49 = vadd.f32 %v459_v41, %v108_v35  ;;  %v529_v50 = vadd.f32 %v528_v42, %v109_v36  ;;  %v134_v23 = vld [vmem:[#allocation4 + $0x280] sm:$0xff]  ;;  %v135_v24 = vld [vmem:[#allocation4 + $0x288] sm:$0xff]  ;;  %v136_v27 = vld [vmem:[#allocation4 + $0x290] sm:$0xff] }
  0x27   :  { %v323_v53 = vadd.f32 %v322_v45, %v110_v39  ;;  %v137_v28 = vld [vmem:[#allocation4 + $0x298] sm:$0xff]  ;;  %v138_v31 = vld [vmem:[#allocation4 + $0x2a0] sm:$0xff]  ;;  %v139_v32 = vld [vmem:[#allocation4 + $0x2a8] sm:$0xff] }
  0x28   :  { %v392_v54 = vadd.f32 %v391_v46, %v111_v40  ;;  %v461_v57 = vadd.f32 %v460_v49, %v112_v43  ;;  %v530_v58 = vadd.f32 %v529_v50, %v113_v44  ;;  %v140_v35 = vld [vmem:[#allocation4 + $0x2b0] sm:$0xff]  ;;  %v141_v36 = vld [vmem:[#allocation4 + $0x2b8] sm:$0xff]  ;;  %v142_v39 = vld [vmem:[#allocation4 + $0x2c0] sm:$0xff] }
  0x29   :  { %v324_v61 = vadd.f32 %v323_v53, %v114_v47  ;;  %v143_v40 = vld [vmem:[#allocation4 + $0x2c8] sm:$0xff]  ;;  %v144_v43 = vld [vmem:[#allocation4 + $0x2d0] sm:$0xff]  ;;  %v145_v44 = vld [vmem:[#allocation4 + $0x2d8] sm:$0xff] }
  0x2a   :  { %v393_v62 = vadd.f32 %v392_v54, %v115_v48  ;;  %v462_v1 = vadd.f32 %v461_v57, %v116_v51  ;;  %v531_v2 = vadd.f32 %v530_v58, %v117_v52  ;;  %v146_v47 = vld [vmem:[#allocation4 + $0x2e0] sm:$0xff]  ;;  %v147_v48 = vld [vmem:[#allocation4 + $0x2e8] sm:$0xff]  ;;  %v148_v51 = vld [vmem:[#allocation4 + $0x2f0] sm:$0xff] }
  0x2b   :  { %v325_v5 = vadd.f32 %v324_v61, %v118_v55  ;;  %v149_v52 = vld [vmem:[#allocation4 + $0x2f8] sm:$0xff]  ;;  %v150_v55 = vld [vmem:[#allocation4 + $0x300] sm:$0xff] }
  0x2c   :  { %v394_v6 = vadd.f32 %v393_v62, %v119_v56  ;;  %v463_v9 = vadd.f32 %v462_v1, %v120_v59  ;;  %v532_v10 = vadd.f32 %v531_v2, %v121_v60  ;;  %v151_v56 = vld [vmem:[#allocation4 + $0x308] sm:$0xff]  ;;  %v152_v59 = vld [vmem:[#allocation4 + $0x310] sm:$0xff]  ;;  %v153_v60 = vld [vmem:[#allocation4 + $0x318] sm:$0xff] }
  0x2d   :  { %v326_v13 = vadd.f32 %v325_v5, %v122_v63  ;;  %v154_v63 = vld [vmem:[#allocation4 + $0x320] sm:$0xff] }
  0x2e   :  { %v395_v14 = vadd.f32 %v394_v6, %v123_v0  ;;  %v464_v17 = vadd.f32 %v463_v9, %v124_v3  ;;  %v533_v18 = vadd.f32 %v532_v10, %v125_v4  ;;  %v155_v0 = vld [vmem:[#allocation4 + $0x328] sm:$0xff]  ;;  %v156_v3 = vld [vmem:[#allocation4 + $0x330] sm:$0xff]  ;;  %v157_v4 = vld [vmem:[#allocation4 + $0x338] sm:$0xff] }
  0x2f   :  { %v327_v21 = vadd.f32 %v326_v13, %v126_v7  ;;  %v158_v7 = vld [vmem:[#allocation4 + $0x340] sm:$0xff] }
  0x30   :  { %v396_v22 = vadd.f32 %v395_v14, %v127_v8  ;;  %v465_v25 = vadd.f32 %v464_v17, %v128_v11  ;;  %v534_v26 = vadd.f32 %v533_v18, %v129_v12  ;;  %v159_v8 = vld [vmem:[#allocation4 + $0x348] sm:$0xff]  ;;  %v160_v11 = vld [vmem:[#allocation4 + $0x350] sm:$0xff]  ;;  %v161_v12 = vld [vmem:[#allocation4 + $0x358] sm:$0xff] }
  0x31   :  { %v328_v29 = vadd.f32 %v327_v21, %v130_v15  ;;  %v162_v15 = vld [vmem:[#allocation4 + $0x360] sm:$0xff] }
  0x32   :  { %v397_v30 = vadd.f32 %v396_v22, %v131_v16  ;;  %v466_v33 = vadd.f32 %v465_v25, %v132_v19  ;;  %v535_v34 = vadd.f32 %v534_v26, %v133_v20  ;;  %v163_v16 = vld [vmem:[#allocation4 + $0x368] sm:$0xff]  ;;  %v164_v19 = vld [vmem:[#allocation4 + $0x370] sm:$0xff]  ;;  %v165_v20 = vld [vmem:[#allocation4 + $0x378] sm:$0xff] }
  0x33   :  { %v329_v37 = vadd.f32 %v328_v29, %v134_v23  ;;  %v166_v23 = vld [vmem:[#allocation4 + $0x380] sm:$0xff] }
  0x34   :  { %v398_v38 = vadd.f32 %v397_v30, %v135_v24  ;;  %v467_v41 = vadd.f32 %v466_v33, %v136_v27  ;;  %v536_v42 = vadd.f32 %v535_v34, %v137_v28  ;;  %v167_v24 = vld [vmem:[#allocation4 + $0x388] sm:$0xff]  ;;  %v168_v27 = vld [vmem:[#allocation4 + $0x390] sm:$0xff]  ;;  %v169_v28 = vld [vmem:[#allocation4 + $0x398] sm:$0xff] }
  0x35   :  { %v330_v45 = vadd.f32 %v329_v37, %v138_v31  ;;  %v170_v31 = vld [vmem:[#allocation4 + $0x3a0] sm:$0xff] }
  0x36   :  { %v399_v46 = vadd.f32 %v398_v38, %v139_v32  ;;  %v468_v49 = vadd.f32 %v467_v41, %v140_v35  ;;  %v537_v50 = vadd.f32 %v536_v42, %v141_v36  ;;  %v171_v32 = vld [vmem:[#allocation4 + $0x3a8] sm:$0xff]  ;;  %v172_v35 = vld [vmem:[#allocation4 + $0x3b0] sm:$0xff]  ;;  %v173_v36 = vld [vmem:[#allocation4 + $0x3b8] sm:$0xff] }
  0x37   :  { %v331_v53 = vadd.f32 %v330_v45, %v142_v39  ;;  %v174_v39 = vld [vmem:[#allocation4 + $0x3c0] sm:$0xff] }
  0x38   :  { %v400_v54 = vadd.f32 %v399_v46, %v143_v40  ;;  %v469_v57 = vadd.f32 %v468_v49, %v144_v43  ;;  %v538_v58 = vadd.f32 %v537_v50, %v145_v44  ;;  %v175_v40 = vld [vmem:[#allocation4 + $0x3c8] sm:$0xff]  ;;  %v176_v43 = vld [vmem:[#allocation4 + $0x3d0] sm:$0xff]  ;;  %v177_v44 = vld [vmem:[#allocation4 + $0x3d8] sm:$0xff] }
  0x39   :  { %v332_v61 = vadd.f32 %v331_v53, %v146_v47  ;;  %v178_v47 = vld [vmem:[#allocation4 + $0x3e0] sm:$0xff] }
  0x3a   :  { %v401_v62 = vadd.f32 %v400_v54, %v147_v48  ;;  %v470_v1 = vadd.f32 %v469_v57, %v148_v51  ;;  %v539_v2 = vadd.f32 %v538_v58, %v149_v52  ;;  %v179_v48 = vld [vmem:[#allocation4 + $0x3e8] sm:$0xff]  ;;  %v180_v51 = vld [vmem:[#allocation4 + $0x3f0] sm:$0xff]  ;;  %v181_v52 = vld [vmem:[#allocation4 + $0x3f8] sm:$0xff] }
  0x3b   :  { %v333_v5 = vadd.f32 %v332_v61, %v150_v55  ;;  %v182_v55 = vld [vmem:[#allocation4 + $0x400] sm:$0xff] }
  0x3c   :  { %v402_v6 = vadd.f32 %v401_v62, %v151_v56  ;;  %v471_v9 = vadd.f32 %v470_v1, %v152_v59  ;;  %v540_v10 = vadd.f32 %v539_v2, %v153_v60  ;;  %v183_v56 = vld [vmem:[#allocation4 + $0x408] sm:$0xff]  ;;  %v184_v59 = vld [vmem:[#allocation4 + $0x410] sm:$0xff]  ;;  %v185_v60 = vld [vmem:[#allocation4 + $0x418] sm:$0xff] }
  0x3d   :  { %v334_v13 = vadd.f32 %v333_v5, %v154_v63  ;;  %v186_v63 = vld [vmem:[#allocation4 + $0x420] sm:$0xff] }
  0x3e   :  { %v403_v14 = vadd.f32 %v402_v6, %v155_v0  ;;  %v472_v17 = vadd.f32 %v471_v9, %v156_v3  ;;  %v541_v18 = vadd.f32 %v540_v10, %v157_v4  ;;  %v187_v0 = vld [vmem:[#allocation4 + $0x428] sm:$0xff]  ;;  %v188_v3 = vld [vmem:[#allocation4 + $0x430] sm:$0xff]  ;;  %v189_v4 = vld [vmem:[#allocation4 + $0x438] sm:$0xff] }
  0x3f   :  { %v335_v21 = vadd.f32 %v334_v13, %v158_v7  ;;  %v190_v7 = vld [vmem:[#allocation4 + $0x440] sm:$0xff] }
  0x40   :  { %v404_v22 = vadd.f32 %v403_v14, %v159_v8  ;;  %v473_v25 = vadd.f32 %v472_v17, %v160_v11  ;;  %v542_v26 = vadd.f32 %v541_v18, %v161_v12  ;;  %v191_v8 = vld [vmem:[#allocation4 + $0x448] sm:$0xff]  ;;  %v192_v11 = vld [vmem:[#allocation4 + $0x450] sm:$0xff]  ;;  %v193_v12 = vld [vmem:[#allocation4 + $0x458] sm:$0xff] }
  0x41   :  { %v336_v29 = vadd.f32 %v335_v21, %v162_v15  ;;  %v194_v15 = vld [vmem:[#allocation4 + $0x460] sm:$0xff] }
  0x42   :  { %v405_v30 = vadd.f32 %v404_v22, %v163_v16  ;;  %v474_v33 = vadd.f32 %v473_v25, %v164_v19  ;;  %v543_v34 = vadd.f32 %v542_v26, %v165_v20  ;;  %v195_v16 = vld [vmem:[#allocation4 + $0x468] sm:$0xff]  ;;  %v196_v19 = vld [vmem:[#allocation4 + $0x470] sm:$0xff]  ;;  %v197_v20 = vld [vmem:[#allocation4 + $0x478] sm:$0xff] }
  0x43   :  { %v337_v37 = vadd.f32 %v336_v29, %v166_v23  ;;  %v198_v23 = vld [vmem:[#allocation4 + $0x480] sm:$0xff] }
  0x44   :  { %v406_v38 = vadd.f32 %v405_v30, %v167_v24  ;;  %v475_v41 = vadd.f32 %v474_v33, %v168_v27  ;;  %v544_v42 = vadd.f32 %v543_v34, %v169_v28  ;;  %v199_v24 = vld [vmem:[#allocation4 + $0x488] sm:$0xff]  ;;  %v200_v27 = vld [vmem:[#allocation4 + $0x490] sm:$0xff]  ;;  %v201_v28 = vld [vmem:[#allocation4 + $0x498] sm:$0xff] }
  0x45   :  { %v338_v45 = vadd.f32 %v337_v37, %v170_v31  ;;  %v202_v31 = vld [vmem:[#allocation4 + $0x4a0] sm:$0xff] }
  0x46   :  { %v407_v46 = vadd.f32 %v406_v38, %v171_v32  ;;  %v476_v49 = vadd.f32 %v475_v41, %v172_v35  ;;  %v545_v50 = vadd.f32 %v544_v42, %v173_v36  ;;  %v203_v32 = vld [vmem:[#allocation4 + $0x4a8] sm:$0xff]  ;;  %v204_v35 = vld [vmem:[#allocation4 + $0x4b0] sm:$0xff]  ;;  %v205_v36 = vld [vmem:[#allocation4 + $0x4b8] sm:$0xff] }
  0x47   :  { %v339_v53 = vadd.f32 %v338_v45, %v174_v39  ;;  %v206_v39 = vld [vmem:[#allocation4 + $0x4c0] sm:$0xff] }
  0x48   :  { %v408_v54 = vadd.f32 %v407_v46, %v175_v40  ;;  %v477_v57 = vadd.f32 %v476_v49, %v176_v43  ;;  %v546_v58 = vadd.f32 %v545_v50, %v177_v44  ;;  %v207_v40 = vld [vmem:[#allocation4 + $0x4c8] sm:$0xff]  ;;  %v208_v43 = vld [vmem:[#allocation4 + $0x4d0] sm:$0xff]  ;;  %v209_v44 = vld [vmem:[#allocation4 + $0x4d8] sm:$0xff] }
  0x49   :  { %v340_v61 = vadd.f32 %v339_v53, %v178_v47  ;;  %v210_v47 = vld [vmem:[#allocation4 + $0x4e0] sm:$0xff] }
  0x4a   :  { %v409_v62 = vadd.f32 %v408_v54, %v179_v48  ;;  %v478_v1 = vadd.f32 %v477_v57, %v180_v51  ;;  %v547_v2 = vadd.f32 %v546_v58, %v181_v52  ;;  %v211_v48 = vld [vmem:[#allocation4 + $0x4e8] sm:$0xff]  ;;  %v212_v51 = vld [vmem:[#allocation4 + $0x4f0] sm:$0xff]  ;;  %v213_v52 = vld [vmem:[#allocation4 + $0x4f8] sm:$0xff] }
  0x4b   :  { %v341_v5 = vadd.f32 %v340_v61, %v182_v55  ;;  %v214_v55 = vld [vmem:[#allocation4 + $0x500] sm:$0xff] }
  0x4c   :  { %v410_v6 = vadd.f32 %v409_v62, %v183_v56  ;;  %v479_v9 = vadd.f32 %v478_v1, %v184_v59  ;;  %v548_v10 = vadd.f32 %v547_v2, %v185_v60  ;;  %v215_v56 = vld [vmem:[#allocation4 + $0x508] sm:$0xff]  ;;  %v216_v59 = vld [vmem:[#allocation4 + $0x510] sm:$0xff]  ;;  %v217_v60 = vld [vmem:[#allocation4 + $0x518] sm:$0xff] }
  0x4d   :  { %v342_v13 = vadd.f32 %v341_v5, %v186_v63  ;;  %v218_v63 = vld [vmem:[#allocation4 + $0x520] sm:$0xff] }
  0x4e   :  { %v411_v14 = vadd.f32 %v410_v6, %v187_v0  ;;  %v480_v17 = vadd.f32 %v479_v9, %v188_v3  ;;  %v549_v18 = vadd.f32 %v548_v10, %v189_v4  ;;  %v219_v0 = vld [vmem:[#allocation4 + $0x528] sm:$0xff]  ;;  %v220_v3 = vld [vmem:[#allocation4 + $0x530] sm:$0xff]  ;;  %v221_v4 = vld [vmem:[#allocation4 + $0x538] sm:$0xff] }
  0x4f   :  { %v343_v21 = vadd.f32 %v342_v13, %v190_v7  ;;  %v222_v7 = vld [vmem:[#allocation4 + $0x540] sm:$0xff] }
  0x50   :  { %v412_v22 = vadd.f32 %v411_v14, %v191_v8  ;;  %v481_v25 = vadd.f32 %v480_v17, %v192_v11  ;;  %v550_v26 = vadd.f32 %v549_v18, %v193_v12  ;;  %v223_v8 = vld [vmem:[#allocation4 + $0x548] sm:$0xff]  ;;  %v224_v11 = vld [vmem:[#allocation4 + $0x550] sm:$0xff]  ;;  %v225_v12 = vld [vmem:[#allocation4 + $0x558] sm:$0xff] }
  0x51   :  { %v344_v29 = vadd.f32 %v343_v21, %v194_v15  ;;  %v226_v15 = vld [vmem:[#allocation4 + $0x560] sm:$0xff] }
  0x52   :  { %v413_v30 = vadd.f32 %v412_v22, %v195_v16  ;;  %v482_v33 = vadd.f32 %v481_v25, %v196_v19  ;;  %v551_v34 = vadd.f32 %v550_v26, %v197_v20  ;;  %v227_v16 = vld [vmem:[#allocation4 + $0x568] sm:$0xff]  ;;  %v228_v19 = vld [vmem:[#allocation4 + $0x570] sm:$0xff]  ;;  %v229_v20 = vld [vmem:[#allocation4 + $0x578] sm:$0xff] }
  0x53   :  { %v345_v37 = vadd.f32 %v344_v29, %v198_v23  ;;  %v230_v23 = vld [vmem:[#allocation4 + $0x580] sm:$0xff] }
  0x54   :  { %v414_v38 = vadd.f32 %v413_v30, %v199_v24  ;;  %v483_v41 = vadd.f32 %v482_v33, %v200_v27  ;;  %v552_v42 = vadd.f32 %v551_v34, %v201_v28  ;;  %v231_v24 = vld [vmem:[#allocation4 + $0x588] sm:$0xff]  ;;  %v232_v27 = vld [vmem:[#allocation4 + $0x590] sm:$0xff]  ;;  %v233_v28 = vld [vmem:[#allocation4 + $0x598] sm:$0xff] }
  0x55   :  { %v346_v45 = vadd.f32 %v345_v37, %v202_v31  ;;  %v234_v31 = vld [vmem:[#allocation4 + $0x5a0] sm:$0xff] }
  0x56   :  { %v415_v46 = vadd.f32 %v414_v38, %v203_v32  ;;  %v484_v49 = vadd.f32 %v483_v41, %v204_v35  ;;  %v553_v50 = vadd.f32 %v552_v42, %v205_v36  ;;  %v235_v32 = vld [vmem:[#allocation4 + $0x5a8] sm:$0xff]  ;;  %v236_v35 = vld [vmem:[#allocation4 + $0x5b0] sm:$0xff]  ;;  %v237_v36 = vld [vmem:[#allocation4 + $0x5b8] sm:$0xff] }
  0x57   :  { %v347_v53 = vadd.f32 %v346_v45, %v206_v39  ;;  %v238_v39 = vld [vmem:[#allocation4 + $0x5c0] sm:$0xff] }
  0x58   :  { %v416_v54 = vadd.f32 %v415_v46, %v207_v40  ;;  %v485_v57 = vadd.f32 %v484_v49, %v208_v43  ;;  %v554_v58 = vadd.f32 %v553_v50, %v209_v44  ;;  %v239_v40 = vld [vmem:[#allocation4 + $0x5c8] sm:$0xff]  ;;  %v240_v43 = vld [vmem:[#allocation4 + $0x5d0] sm:$0xff]  ;;  %v241_v44 = vld [vmem:[#allocation4 + $0x5d8] sm:$0xff] }
  0x59   :  { %v348_v61 = vadd.f32 %v347_v53, %v210_v47  ;;  %v242_v47 = vld [vmem:[#allocation4 + $0x5e0] sm:$0xff] }
  0x5a   :  { %v417_v62 = vadd.f32 %v416_v54, %v211_v48  ;;  %v486_v1 = vadd.f32 %v485_v57, %v212_v51  ;;  %v555_v2 = vadd.f32 %v554_v58, %v213_v52  ;;  %v243_v48 = vld [vmem:[#allocation4 + $0x5e8] sm:$0xff]  ;;  %v244_v51 = vld [vmem:[#allocation4 + $0x5f0] sm:$0xff]  ;;  %v245_v52 = vld [vmem:[#allocation4 + $0x5f8] sm:$0xff] }
  0x5b   :  { %v349_v5 = vadd.f32 %v348_v61, %v214_v55  ;;  %v246_v55 = vld [vmem:[#allocation4 + $0x600] sm:$0xff] }
  0x5c   :  { %v418_v6 = vadd.f32 %v417_v62, %v215_v56  ;;  %v487_v9 = vadd.f32 %v486_v1, %v216_v59  ;;  %v556_v10 = vadd.f32 %v555_v2, %v217_v60  ;;  %v247_v56 = vld [vmem:[#allocation4 + $0x608] sm:$0xff]  ;;  %v248_v59 = vld [vmem:[#allocation4 + $0x610] sm:$0xff]  ;;  %v249_v60 = vld [vmem:[#allocation4 + $0x618] sm:$0xff] }
  0x5d   :  { %v350_v13 = vadd.f32 %v349_v5, %v218_v63  ;;  %v250_v63 = vld [vmem:[#allocation4 + $0x620] sm:$0xff] }
  0x5e   :  { %v419_v14 = vadd.f32 %v418_v6, %v219_v0  ;;  %v488_v17 = vadd.f32 %v487_v9, %v220_v3  ;;  %v557_v18 = vadd.f32 %v556_v10, %v221_v4  ;;  %v251_v0 = vld [vmem:[#allocation4 + $0x628] sm:$0xff]  ;;  %v252_v3 = vld [vmem:[#allocation4 + $0x630] sm:$0xff]  ;;  %v253_v4 = vld [vmem:[#allocation4 + $0x638] sm:$0xff] }
  0x5f   :  { %v351_v21 = vadd.f32 %v350_v13, %v222_v7  ;;  %v254_v7 = vld [vmem:[#allocation4 + $0x640] sm:$0xff] }
  0x60   :  { %v420_v22 = vadd.f32 %v419_v14, %v223_v8  ;;  %v489_v25 = vadd.f32 %v488_v17, %v224_v11  ;;  %v558_v26 = vadd.f32 %v557_v18, %v225_v12  ;;  %v255_v8 = vld [vmem:[#allocation4 + $0x648] sm:$0xff]  ;;  %v256_v11 = vld [vmem:[#allocation4 + $0x650] sm:$0xff]  ;;  %v257_v12 = vld [vmem:[#allocation4 + $0x658] sm:$0xff] }
  0x61   :  { %v352_v29 = vadd.f32 %v351_v21, %v226_v15  ;;  %v258_v15 = vld [vmem:[#allocation4 + $0x660] sm:$0xff] }
  0x62   :  { %v421_v30 = vadd.f32 %v420_v22, %v227_v16  ;;  %v490_v33 = vadd.f32 %v489_v25, %v228_v19  ;;  %v559_v34 = vadd.f32 %v558_v26, %v229_v20  ;;  %v259_v16 = vld [vmem:[#allocation4 + $0x668] sm:$0xff]  ;;  %v260_v19 = vld [vmem:[#allocation4 + $0x670] sm:$0xff]  ;;  %v261_v20 = vld [vmem:[#allocation4 + $0x678] sm:$0xff] }
  0x63   :  { %v353_v37 = vadd.f32 %v352_v29, %v230_v23  ;;  %v262_v23 = vld [vmem:[#allocation4 + $0x680] sm:$0xff] }
  0x64   :  { %v422_v38 = vadd.f32 %v421_v30, %v231_v24  ;;  %v491_v41 = vadd.f32 %v490_v33, %v232_v27  ;;  %v560_v42 = vadd.f32 %v559_v34, %v233_v28  ;;  %v263_v24 = vld [vmem:[#allocation4 + $0x688] sm:$0xff]  ;;  %v264_v27 = vld [vmem:[#allocation4 + $0x690] sm:$0xff]  ;;  %v265_v28 = vld [vmem:[#allocation4 + $0x698] sm:$0xff] }
  0x65   :  { %v354_v45 = vadd.f32 %v353_v37, %v234_v31  ;;  %v266_v31 = vld [vmem:[#allocation4 + $0x6a0] sm:$0xff] }
  0x66   :  { %v423_v46 = vadd.f32 %v422_v38, %v235_v32  ;;  %v492_v49 = vadd.f32 %v491_v41, %v236_v35  ;;  %v561_v50 = vadd.f32 %v560_v42, %v237_v36  ;;  %v267_v32 = vld [vmem:[#allocation4 + $0x6a8] sm:$0xff]  ;;  %v268_v35 = vld [vmem:[#allocation4 + $0x6b0] sm:$0xff]  ;;  %v269_v36 = vld [vmem:[#allocation4 + $0x6b8] sm:$0xff] }
  0x67   :  { %v355_v53 = vadd.f32 %v354_v45, %v238_v39  ;;  %v270_v39 = vld [vmem:[#allocation4 + $0x6c0] sm:$0xff] }
  0x68   :  { %v424_v54 = vadd.f32 %v423_v46, %v239_v40  ;;  %v493_v57 = vadd.f32 %v492_v49, %v240_v43  ;;  %v562_v58 = vadd.f32 %v561_v50, %v241_v44  ;;  %v271_v40 = vld [vmem:[#allocation4 + $0x6c8] sm:$0xff]  ;;  %v272_v43 = vld [vmem:[#allocation4 + $0x6d0] sm:$0xff]  ;;  %v273_v44 = vld [vmem:[#allocation4 + $0x6d8] sm:$0xff] }
  0x69   :  { %v356_v61 = vadd.f32 %v355_v53, %v242_v47  ;;  %v274_v47 = vld [vmem:[#allocation4 + $0x6e0] sm:$0xff] }
  0x6a   :  { %v425_v62 = vadd.f32 %v424_v54, %v243_v48  ;;  %v494_v1 = vadd.f32 %v493_v57, %v244_v51  ;;  %v563_v2 = vadd.f32 %v562_v58, %v245_v52  ;;  %v275_v48 = vld [vmem:[#allocation4 + $0x6e8] sm:$0xff]  ;;  %v276_v51 = vld [vmem:[#allocation4 + $0x6f0] sm:$0xff]  ;;  %v277_v52 = vld [vmem:[#allocation4 + $0x6f8] sm:$0xff] }
  0x6b   :  { %v357_v5 = vadd.f32 %v356_v61, %v246_v55  ;;  %v278_v55 = vld [vmem:[#allocation4 + $0x700] sm:$0xff] }
  0x6c   :  { %v426_v6 = vadd.f32 %v425_v62, %v247_v56  ;;  %v495_v9 = vadd.f32 %v494_v1, %v248_v59  ;;  %v564_v10 = vadd.f32 %v563_v2, %v249_v60  ;;  %v279_v56 = vld [vmem:[#allocation4 + $0x708] sm:$0xff]  ;;  %v280_v59 = vld [vmem:[#allocation4 + $0x710] sm:$0xff]  ;;  %v281_v60 = vld [vmem:[#allocation4 + $0x718] sm:$0xff] }
  0x6d   :  { %v358_v13 = vadd.f32 %v357_v5, %v250_v63  ;;  %v282_v63 = vld [vmem:[#allocation4 + $0x720] sm:$0xff] }
  0x6e   :  { %v427_v14 = vadd.f32 %v426_v6, %v251_v0  ;;  %v496_v17 = vadd.f32 %v495_v9, %v252_v3  ;;  %v565_v18 = vadd.f32 %v564_v10, %v253_v4  ;;  %v283_v0 = vld [vmem:[#allocation4 + $0x728] sm:$0xff]  ;;  %v284_v3 = vld [vmem:[#allocation4 + $0x730] sm:$0xff]  ;;  %v285_v4 = vld [vmem:[#allocation4 + $0x738] sm:$0xff] }
  0x6f   :  { %v359_v21 = vadd.f32 %v358_v13, %v254_v7  ;;  %v286_v7 = vld [vmem:[#allocation4 + $0x740] sm:$0xff] }
  0x70   :  { %v428_v22 = vadd.f32 %v427_v14, %v255_v8  ;;  %v497_v25 = vadd.f32 %v496_v17, %v256_v11  ;;  %v566_v26 = vadd.f32 %v565_v18, %v257_v12  ;;  %v287_v8 = vld [vmem:[#allocation4 + $0x748] sm:$0xff]  ;;  %v288_v11 = vld [vmem:[#allocation4 + $0x750] sm:$0xff]  ;;  %v289_v12 = vld [vmem:[#allocation4 + $0x758] sm:$0xff] }
  0x71   :  { %v360_v29 = vadd.f32 %v359_v21, %v258_v15  ;;  %v290_v15 = vld [vmem:[#allocation4 + $0x760] sm:$0xff] }
  0x72   :  { %v429_v30 = vadd.f32 %v428_v22, %v259_v16  ;;  %v498_v33 = vadd.f32 %v497_v25, %v260_v19  ;;  %v567_v34 = vadd.f32 %v566_v26, %v261_v20  ;;  %v291_v16 = vld [vmem:[#allocation4 + $0x768] sm:$0xff]  ;;  %v292_v19 = vld [vmem:[#allocation4 + $0x770] sm:$0xff]  ;;  %v293_v20 = vld [vmem:[#allocation4 + $0x778] sm:$0xff] }
  0x73   :  { %v361_v37 = vadd.f32 %v360_v29, %v262_v23  ;;  %v294_v23 = vld [vmem:[#allocation4 + $0x780] sm:$0xff] }
  0x74   :  { %v430_v38 = vadd.f32 %v429_v30, %v263_v24  ;;  %v499_v41 = vadd.f32 %v498_v33, %v264_v27  ;;  %v568_v42 = vadd.f32 %v567_v34, %v265_v28  ;;  %v295_v24 = vld [vmem:[#allocation4 + $0x788] sm:$0xff]  ;;  %v296_v27 = vld [vmem:[#allocation4 + $0x790] sm:$0xff]  ;;  %v297_v28 = vld [vmem:[#allocation4 + $0x798] sm:$0xff] }
  0x75   :  { %v362_v45 = vadd.f32 %v361_v37, %v266_v31  ;;  %v298_v31 = vld [vmem:[#allocation4 + $0x7a0] sm:$0xff] }
  0x76   :  { %v431_v46 = vadd.f32 %v430_v38, %v267_v32  ;;  %v500_v49 = vadd.f32 %v499_v41, %v268_v35  ;;  %v569_v50 = vadd.f32 %v568_v42, %v269_v36  ;;  %v299_v32 = vld [vmem:[#allocation4 + $0x7a8] sm:$0xff]  ;;  %v300_v35 = vld [vmem:[#allocation4 + $0x7b0] sm:$0xff]  ;;  %v301_v36 = vld [vmem:[#allocation4 + $0x7b8] sm:$0xff] }
  0x77   :  { %v363_v53 = vadd.f32 %v362_v45, %v270_v39  ;;  %v302_v39 = vld [vmem:[#allocation4 + $0x7c0] sm:$0xff] }
  0x78   :  { %v432_v54 = vadd.f32 %v431_v46, %v271_v40  ;;  %v501_v57 = vadd.f32 %v500_v49, %v272_v43  ;;  %v570_v58 = vadd.f32 %v569_v50, %v273_v44  ;;  %v303_v40 = vld [vmem:[#allocation4 + $0x7c8] sm:$0xff]  ;;  %v304_v43 = vld [vmem:[#allocation4 + $0x7d0] sm:$0xff]  ;;  %v305_v44 = vld [vmem:[#allocation4 + $0x7d8] sm:$0xff] }
  0x79   :  { %v364_v61 = vadd.f32 %v363_v53, %v274_v47  ;;  %v306_v47 = vld [vmem:[#allocation4 + $0x7e0] sm:$0xff] }
  0x7a   :  { %v433_v62 = vadd.f32 %v432_v54, %v275_v48  ;;  %v502_v1 = vadd.f32 %v501_v57, %v276_v51  ;;  %v571_v2 = vadd.f32 %v570_v58, %v277_v52  ;;  %v307_v48 = vld [vmem:[#allocation4 + $0x7e8] sm:$0xff]  ;;  %v308_v51 = vld [vmem:[#allocation4 + $0x7f0] sm:$0xff]  ;;  %v309_v52 = vld [vmem:[#allocation4 + $0x7f8] sm:$0xff] }
  0x7b   :  { %v365_v5 = vadd.f32 %v364_v61, %v278_v55 }
  0x7c   :  { %v434_v6 = vadd.f32 %v433_v62, %v279_v56  ;;  %v503_v9 = vadd.f32 %v502_v1, %v280_v59  ;;  %v572_v10 = vadd.f32 %v571_v2, %v281_v60 }
  0x7d   :  { %v366_v13 = vadd.f32 %v365_v5, %v282_v63 }
  0x7e   :  { %v435_v14 = vadd.f32 %v434_v6, %v283_v0  ;;  %v504_v17 = vadd.f32 %v503_v9, %v284_v3  ;;  %v573_v18 = vadd.f32 %v572_v10, %v285_v4 }
  0x7f   :  { %v367_v21 = vadd.f32 %v366_v13, %v286_v7 }
  0x80   :  { %v436_v22 = vadd.f32 %v435_v14, %v287_v8  ;;  %v505_v25 = vadd.f32 %v504_v17, %v288_v11  ;;  %v574_v26 = vadd.f32 %v573_v18, %v289_v12 }
  0x81   :  { %v368_v29 = vadd.f32 %v367_v21, %v290_v15 }
  0x82   :  { %v437_v30 = vadd.f32 %v436_v22, %v291_v16  ;;  %v506_v33 = vadd.f32 %v505_v25, %v292_v19  ;;  %v575_v34 = vadd.f32 %v574_v26, %v293_v20 }
  0x83   :  { %v369_v37 = vadd.f32 %v368_v29, %v294_v23 }
  0x84   :  { %v438_v38 = vadd.f32 %v437_v30, %v295_v24  ;;  %v507_v41 = vadd.f32 %v506_v33, %v296_v27  ;;  %v576_v42 = vadd.f32 %v575_v34, %v297_v28  ;;  %v586_v24 = vld [vmem:[#allocation2] sm:$0xf] }
  0x85   :  { %v370_v45 = vadd.f32 %v369_v37, %v298_v31 }
  0x86   :  { %v439_v46 = vadd.f32 %v438_v38, %v299_v32  ;;  %v508_v49 = vadd.f32 %v507_v41, %v300_v35  ;;  %v577_v50 = vadd.f32 %v576_v42, %v301_v36 }
  0x87   :  { %v371_v53 = vadd.f32 %v370_v45, %v302_v39 }
  0x88   :  { %v440_v54 = vadd.f32 %v439_v46, %v303_v40  ;;  %v509_v55 = vadd.f32 %v508_v49, %v304_v43  ;;  %v578_v56 = vadd.f32 %v577_v50, %v305_v44  ;;  %v620_v40 = vld [vmem:[%s729_s2] sm:$0x1] }
  0x89   :  { %v372_v57 = vadd.f32 %v371_v53, %v306_v47 }
  0x8a   :  { %v441_v58 = vadd.f32 %v440_v54, %v307_v48  ;;  %v510_v59 = vadd.f32 %v509_v55, %v308_v51  ;;  %v579_v60 = vadd.f32 %v578_v56, %v309_v52 }
  0x8b   :  { %v373_v61 = vrot.slane %v372_v57, 4 }
  0x8c   :  { %v442_v62 = vrot.slane %v441_v58, 4  ;;  %v511_v63 = vrot.slane %v510_v59, 4  ;;  %v580_v0 = vrot.slane %v579_v60, 4 }
  0x8d   :  { %v374_v1 = vadd.f32 %v373_v61, %v372_v57 }
  0x8e   :  { %v443_v2 = vadd.f32 %v442_v62, %v441_v58  ;;  %v512_v3 = vadd.f32 %v511_v63, %v510_v59  ;;  %v581_v4 = vadd.f32 %v580_v0, %v579_v60 }
  0x8f   :  { %v375_v5 = vrot.slane %v374_v1, 2 }
  0x90   :  { %v444_v6 = vrot.slane %v443_v2, 2  ;;  %v513_v7 = vrot.slane %v512_v3, 2  ;;  %v582_v8 = vrot.slane %v581_v4, 2 }
  0x91   :  { %v376_v9 = vadd.f32 %v375_v5, %v374_v1 }
  0x92   :  { %v445_v10 = vadd.f32 %v444_v6, %v443_v2  ;;  %v514_v11 = vadd.f32 %v513_v7, %v512_v3  ;;  %v583_v12 = vadd.f32 %v582_v8, %v581_v4 }
  0x93   :  { %v377_v13 = vrot.slane %v376_v9, 1 }
  0x94   :  { %v446_v14 = vrot.slane %v445_v10, 1  ;;  %v515_v15 = vrot.slane %v514_v11, 1  ;;  %v584_v16 = vrot.slane %v583_v12, 1 }
  0x95   :  { %v378_v17 = vadd.f32 %v377_v13, %v376_v9 }
  0x96   :  { %v447_v18 = vadd.f32 %v446_v14, %v445_v10  ;;  %v516_v19 = vadd.f32 %v515_v15, %v514_v11  ;;  %v585_v20 = vadd.f32 %v584_v16, %v583_v12 }
  0x98   :  { %v591_v21 = vrot.slane %v447_v18, 7  ;;  %v592_v22 = vrot.slane %v516_v19, 6  ;;  %v593_v23 = vrot.slane %v585_v20, 5 }
  0x9a   :  { %v595_v25 = vsel %vm594_vm1, %v378_v17, %v591_v21  ;;  %v597_v26 = vsel %vm596_vm2, %v592_v22, %v593_v23 }
  0x9b   :  { %v599_v27 = vsel %vm598_vm3, %v595_v25, %v597_v26 }
  0x9c   :  { %v601_v28 = vmul.f32 %v599_v27, %v586_v24 }
  0x9e   :  { %v603_v29 = vperm.slane %v601_v28, 0  ;;  %v604_v30 = vperm.slane %v601_v28, 1  ;;  %v605_v31 = vperm.slane %v601_v28, 2  ;;  %v606_v32 = vperm.slane %v601_v28, 3 }
  0xa0   :  { %v611_v33 = vsel %vm594_vm1, %v603_v29, 0.0  ;;  %v612_v34 = vsel %vm594_vm1, %v604_v30, 0.0  ;;  %v614_v35 = vsel %vm594_vm1, %v605_v31, 0.0  ;;  %v616_v37 = vsel %vm594_vm1, %v606_v32, 0.0 }
  0xa1   :  { %v613_v36 = vadd.f32 %v612_v34, %v611_v33 }
  0xa3   :  { %v615_v38 = vadd.f32 %v614_v35, %v613_v36 }
  0xa5   :  { %v617_v39 = vadd.f32 %v616_v37, %v615_v38 }
  0xa7   :  { %618 = vadd.xlane.f32.xlu0 %v617_v39 }
 0x11a   :  { %v619_v41 = vpop.xlane.xlu0 %618 }
 0x11b   :  { %v621_v42 = vadd.f32 %v620_v40, %v619_v41 }
 0x11d   :  { %623 = vst.msk [vmem:[%s729_s2] sm:$0x1] %vm622_vm4, %v621_v42 }
 0x11e   :  { %628 = vsyncpa [#allocation3], 1 }
 0x11f   :  { %629 = vsyncpa [#allocation5], 1 }

</bundles_post_ra>
